<compile_context>
chip_gen: v6e
topology: v6e:2x2x1
jax: 0.10.0
libtpu: 0.0.40
codegen_flags: <defaults>
</compile_context>

<pallas_src>
import functools
from typing import NamedTuple

import jax
import jax.numpy as jnp
from jax.experimental import pallas as pl
from jax.experimental.pallas import tpu as pltpu


def _round_up(x, m):
    return ((x + m - 1) // m) * m


def _cdiv(a, b):
    return (a + b - 1) // b


# --------------------------------------------------------------------------- #
# Hardware introspection (with safe fallbacks)
# --------------------------------------------------------------------------- #

def _tpu_generation():
    try:
        kind = jax.devices()[0].device_kind.lower()
    except Exception:
        return "unknown"
    if "v5 lite" in kind or "v5e" in kind or "v5litepod" in kind:
        return "v5e"
    if "v6" in kind:
        return "v6e"
    if "v7" in kind:
        return "v7x"
    if "v5p" in kind or "v5" in kind:
        return "v5p"
    if "v4" in kind:
        return "v4"
    return "unknown"


def _vmem_capacity_bytes(gen):
    try:
        info = pltpu.get_tpu_info()
        cap = getattr(info, "vmem_capacity_bytes", None)
        if cap:
            return int(cap)
    except Exception:
        pass
    # v7x has 64 MiB / TensorCore, everything else documented here has 128 MiB.
    return (64 if gen == "v7x" else 128) * 2**20


def _num_tensorcores(gen):
    # Chips where the "parallel" grid axis can shard across multiple cores.
    return 2 if gen in ("v7x", "v5p", "v4") else 1


# --------------------------------------------------------------------------- #
# One-time weight preparation (hoisted out of the per-call wrapper)
# --------------------------------------------------------------------------- #

class FFNParams(NamedTuple):
    w1t: jax.Array   # (E_pad, d_ff_pad)  compute_dtype   (W1^T, padded)
    b1r: jax.Array   # (1, d_ff_pad)      f32
    w2t: jax.Array   # (d_ff_pad, E_pad)  compute_dtype   (W2^T, padded)
    b2r: jax.Array   # (1, E_pad)         f32
    E: int
    d_ff: int


def prepare_params(w1, b1, w2, b2, *, compute_dtype=jnp.bfloat16):
    """One-time transpose + pad + cast of the FFN weights.

    w1: (d_ff, E), b1: (d_ff,)   (PyTorch nn.Linear layout)
    w2: (E, d_ff), b2: (E,)
    """
    d_ff, E = w1.shape
    assert w2.shape == (E, d_ff)
    # E -> multiple of 256 (v6e/v7x MXU tile; fine on v5e), d_ff -> multiple of
    # 512 so every candidate reduction tile (128/256/512) divides it exactly.
    E_pad = _round_up(E, 256)
    d_ff_pad = _round_up(d_ff, 512)
    w1t = jnp.pad(w1.T, ((0, E_pad - E), (0, d_ff_pad - d_ff))).astype(compute_dtype)
    w2t = jnp.pad(w2.T, ((0, d_ff_pad - d_ff), (0, E_pad - E))).astype(compute_dtype)
    b1r = jnp.pad(b1, (0, d_ff_pad - d_ff)).astype(jnp.float32).reshape(1, d_ff_pad)
    b2r = jnp.pad(b2, (0, E_pad - E)).astype(jnp.float32).reshape(1, E_pad)
    return FFNParams(w1t, b1r, w2t, b2r, int(E), int(d_ff))


# --------------------------------------------------------------------------- #
# Kernels
# --------------------------------------------------------------------------- #

def _ffn_kernel_scratch_acc(x_ref, w1_ref, b1_ref, w2_ref, b2_ref, o_ref,
                            acc_ref, *, tk):
    # x_ref:  (tm, E_pad)      compute_dtype
    # w1_ref: (E_pad, tk)      compute_dtype   (k-th d_ff tile of W1^T)
    # b1_ref: (1, d_ff_pad)    f32             (full row, constant index map)
    # w2_ref: (tk, E_pad)      compute_dtype   (k-th d_ff tile of W2^T)
    # b2_ref: (1, E_pad)       f32
    # o_ref:  (tm, E_pad)      output dtype
    # acc_ref:(tm, E_pad)      f32 accumulator, resident across the d_ff axis
    k = pl.program_id(1)

    @pl.when(k == 0)
    def _():
        acc_ref[...] = jnp.broadcast_to(
            b2_ref[...].astype(jnp.float32), acc_ref.shape)

    b1_blk = b1_ref[:, pl.ds(pl.multiple_of(k * tk, 128), tk)].astype(jnp.float32)
    h = jnp.dot(x_ref[...], w1_ref[...], preferred_element_type=jnp.float32)
    h = jnp.maximum(h + b1_blk, 0.0)
    acc_ref[...] += jnp.dot(h.astype(w2_ref.dtype), w2_ref[...],
                            preferred_element_type=jnp.float32)

    @pl.when(k == pl.num_programs(1) - 1)
    def _():
        o_ref[...] = acc_ref[...].astype(o_ref.dtype)


def _ffn_kernel_acc_in_out(x_ref, w1_ref, b1_ref, w2_ref, b2_ref, o_ref, *, tk):
    # f32 output: accumulate directly into the resident output block (same
    # block index across the d_ff axis), dropping the separate f32 scratch.
    k = pl.program_id(1)

    @pl.when(k == 0)
    def _():
        o_ref[...] = jnp.broadcast_to(
            b2_ref[...].astype(o_ref.dtype), o_ref.shape)

    b1_blk = b1_ref[:, pl.ds(pl.multiple_of(k * tk, 128), tk)].astype(jnp.float32)
    h = jnp.dot(x_ref[...], w1_ref[...], preferred_element_type=jnp.float32)
    h = jnp.maximum(h + b1_blk, 0.0)
    o_ref[...] += jnp.dot(h.astype(w2_ref.dtype), w2_ref[...],
                          preferred_element_type=jnp.float32)


# --------------------------------------------------------------------------- #
# Tile selection (generation-aware, VMEM-budgeted)
# --------------------------------------------------------------------------- #

def _select_tiles(M, E_pad, d_ff_pad, bytes_in, bytes_out, use_scratch_acc,
                  tm=None, tk=None):
    gen = _tpu_generation()
    vmem_budget = int(_vmem_capacity_bytes(gen) * 0.75)
    num_cores = _num_tensorcores(gen)

    if tm is None or tk is None:
        if gen == "v6e":
            tm_d, tk_d = 1024, 512     # AI ~ tm FLOP/weight-byte; needs ~650+
        elif gen == "v7x":
            tm_d, tk_d = 768, 256      # 64 MiB VMEM -> smaller tk
        elif gen == "v5e":
            tm_d, tk_d = 512, 256      # compute-bound earlier; keep h small
        elif gen in ("v5p", "v4"):
            tm_d, tk_d = 768, 512
        else:
            tm_d, tk_d = 512, 256
        tm = tm if tm is not None else tm_d
        tk = tk if tk is not None else tk_d

    # Reduction tile: multiple of 128, divides d_ff_pad (a multiple of 512).
    tk_eff = max(128, min(_round_up(tk, 128), d_ff_pad))
    while d_ff_pad % tk_eff != 0:
        tk_eff -= 128

    # Row tile: multiple of 8, clamped to the (row-padded) problem size.
    M8 = _round_up(max(M, 1), 8)
    tm_eff = min(_round_up(tm, 8), M8)

    # Guarantee >= 1 row tile per TensorCore so the "parallel" axis actually
    # shards across both cores on v7x / megacore parts.
    while num_cores > 1 and _cdiv(M8, tm_eff) < num_cores and tm_eff > 8:
        tm_eff = max(8, _round_up(tm_eff // 2, 8))

    def footprint(tm_, tk_):
        f = 2 * tm_ * E_pad * bytes_in        # x tile (double buffered)
        f += 2 * E_pad * tk_ * bytes_in       # W1^T tile
        f += 2 * tk_ * E_pad * bytes_in       # W2^T tile
        f += 2 * d_ff_pad * 4                 # b1 (full, constant index map)
        f += 2 * E_pad * 4                    # b2
        f += 2 * tm_ * E_pad * bytes_out      # output tile
        if use_scratch_acc:
            f += tm_ * E_pad * 4              # f32 accumulator scratch
        f += tm_ * tk_ * (4 + bytes_in)       # intermediate h (f32 + cast copy)
        return f

    # Auto-shrink until the footprint fits the per-generation budget instead
    # of failing at compile time.
    while footprint(tm_eff, tk_eff) > vmem_budget:
        if tk_eff > 128:
            tk_eff //= 2
        elif tm_eff > 8:
            tm_eff = max(8, _round_up(tm_eff // 2, 8))
        else:
            break

    return tm_eff, tk_eff, vmem_budget


# --------------------------------------------------------------------------- #
# Wrapper
# --------------------------------------------------------------------------- #

def feed_forward(x, params: FFNParams, *, tm=None, tk=None):
    """Position-wise FFN: relu(x @ W1.T + b1) @ W2.T + b2.

    x: (batch, seq, E); params from prepare_params().  Returns x.dtype.
    """
    batch, seq, E = x.shape
    assert E == params.E, (E, params.E)
    d_ff = params.d_ff
    E_pad, d_ff_pad = params.w1t.shape
    compute_dtype = params.w1t.dtype
    out_dtype = x.dtype
    M = batch * seq

    bytes_in = jnp.dtype(compute_dtype).itemsize
    bytes_out = jnp.dtype(out_dtype).itemsize

    # f32 outputs accumulate directly in the resident output block (no scratch).
    use_scratch_acc = out_dtype != jnp.float32

    tm_eff, tk_eff, vmem_budget = _select_tiles(
        M, E_pad, d_ff_pad, bytes_in, bytes_out, use_scratch_acc, tm=tm, tk=tk)

    M_pad = _round_up(M, tm_eff)
    grid = (M_pad // tm_eff, d_ff_pad // tk_eff)

    # Only x is padded / cast per call; weights were prepared once.
    x2 = x.reshape(M, E)
    x2 = jnp.pad(x2, ((0, M_pad - M), (0, E_pad - E))).astype(compute_dtype)

    if use_scratch_acc:
        kernel = functools.partial(_ffn_kernel_scratch_acc, tk=tk_eff)
        scratch_shapes = [pltpu.VMEM((tm_eff, E_pad), jnp.float32)]
    else:
        kernel = functools.partial(_ffn_kernel_acc_in_out, tk=tk_eff)
        scratch_shapes = []

    cost = pl.CostEstimate(
        flops=4 * M * E * d_ff,
        transcendentals=0,
        bytes_accessed=int(
            x2.size * bytes_in
            + M_pad * E_pad * bytes_out
            # weights are re-streamed once per row tile
            + grid[0] * (params.w1t.size * bytes_in
                         + params.w2t.size * bytes_in
                         + params.b1r.size * 4 + params.b2r.size * 4)
        ),
    )

    # TODO(synk): if profiling still shows the weight DMA partially exposed at
    # large tm, add pipeline_mode=pl.Buffered(3) to the W1^T / W2^T BlockSpecs
    # (only with tk<=256 so the extra buffer fits v7x's 64 MiB VMEM).
    out = pl.pallas_call(
        kernel,
        out_shape=jax.ShapeDtypeStruct((M_pad, E_pad), out_dtype),
        grid_spec=pltpu.PrefetchScalarGridSpec(
            num_scalar_prefetch=0,
            grid=grid,
            in_specs=[
                pl.BlockSpec((tm_eff, E_pad), lambda i, k: (i, 0)),   # x rows
                pl.BlockSpec((E_pad, tk_eff), lambda i, k: (0, k)),   # W1^T blk
                pl.BlockSpec((1, d_ff_pad),   lambda i, k: (0, 0)),   # b1 (full)
                pl.BlockSpec((tk_eff, E_pad), lambda i, k: (k, 0)),   # W2^T blk
                pl.BlockSpec((1, E_pad),      lambda i, k: (0, 0)),   # b2
            ],
            out_specs=pl.BlockSpec((tm_eff, E_pad), lambda i, k: (i, 0)),
            scratch_shapes=scratch_shapes,
        ),
        compiler_params=pltpu.CompilerParams(
            dimension_semantics=("parallel", "arbitrary"),
            vmem_limit_bytes=int(vmem_budget),
        ),
        cost_estimate=cost,
    )(x2, params.w1t, params.b1r, params.w2t, params.b2r)

    return out[:M, :E].reshape(batch, seq, E)


# --------------------------------------------------------------------------- #
# Test / demo
# --------------------------------------------------------------------------- #

def init_params(key, embedding_dim, d_ff, dtype=jnp.float32):
    """Deterministic init mimicking nn.Linear default (uniform +/- 1/sqrt(fan_in))."""
    k1, k2, k3, k4 = jax.random.split(key, 4)
    lim1 = 1.0 / (embedding_dim ** 0.5)
    lim2 = 1.0 / (d_ff ** 0.5)
    w1 = jax.random.uniform(k1, (d_ff, embedding_dim), dtype, -lim1, lim1)
    b1 = jax.random.uniform(k2, (d_ff,), dtype, -lim1, lim1)
    w2 = jax.random.uniform(k3, (embedding_dim, d_ff), dtype, -lim2, lim2)
    b2 = jax.random.uniform(k4, (embedding_dim,), dtype, -lim2, lim2)
    return w1, b1, w2, b2


if __name__ == "__main__":
    batch, seq, embedding_dim, d_ff = 2, 8, 32, 128

    key = jax.random.PRNGKey(0)
    kx, kp = jax.random.split(key)
    x = jax.random.normal(kx, (batch, seq, embedding_dim), jnp.float32)
    w1, b1, w2, b2 = init_params(kp, embedding_dim, d_ff)

    # Reference in plain JAX (same math as the PyTorch forward).
    ref = jnp.maximum(x @ w1.T + b1, 0.0) @ w2.T + b2

    # f32 MXU path: bit-faithful to the reference (tight tolerance).
    params_f32 = prepare_params(w1, b1, w2, b2, compute_dtype=jnp.float32)
    y_f32 = feed_forward(x, params_f32)
    jax.block_until_ready(y_f32)
    assert y_f32.shape == (batch, seq, embedding_dim)
    assert jnp.allclose(y_f32, ref, atol=1e-4, rtol=1e-4)

    # bf16 MXU path (production default): weights prepared ONCE and reused;
    # looser tolerance since inputs/weights are bf16 (accumulation stays f32).
    params_bf16 = prepare_params(w1, b1, w2, b2, compute_dtype=jnp.bfloat16)
    y_bf16 = feed_forward(x, params_bf16)
    jax.block_until_ready(y_bf16)
    assert y_bf16.shape == (batch, seq, embedding_dim)
    assert jnp.allclose(y_bf16, ref, atol=3e-2, rtol=3e-2)

    # Second call with the same prepared params (exercises the hoisted-prep path).
    y_bf16_2 = feed_forward(x, params_bf16)
    jax.block_until_ready(y_bf16_2)
    assert jnp.allclose(y_bf16_2, y_bf16)

    print("KERNEL_OK")
</pallas_src>

<mosaic_0001>
module attributes {stable_mosaic.version = 11 : i64} {
  func.func @_ffn_kernel_acc_in_out(%arg0: i32, %arg1: i32, %arg2: memref<16x256xf32, #tpu.memory_space<vmem>>, %arg3: memref<256x256xf32, #tpu.memory_space<vmem>>, %arg4: memref<1x512xf32, #tpu.memory_space<vmem>>, %arg5: memref<256x256xf32, #tpu.memory_space<vmem>>, %arg6: memref<1x256xf32, #tpu.memory_space<vmem>>, %arg7: memref<16x256xf32, #tpu.memory_space<vmem>>) attributes {dimension_semantics = [#tpu.dimension_semantics<parallel>, #tpu.dimension_semantics<arbitrary>], iteration_bounds = array<i64: 1, 2>, scalar_prefetch = 0 : i64, scratch_operands = 0 : i64, tpu.core_type = #tpu.core_type<tc>, window_params = [{transform_indices = @transform_0, window_bounds = array<i64: 16, 256>}, {transform_indices = @transform_1, window_bounds = array<i64: 256, 256>}, {pipeline_mode = #tpu.pipeline_mode<synchronous>, transform_indices = @transform_2, window_bounds = array<i64: 1, 512>}, {transform_indices = @transform_3, window_bounds = array<i64: 256, 256>}, {pipeline_mode = #tpu.pipeline_mode<synchronous>, transform_indices = @transform_4, window_bounds = array<i64: 1, 256>}, {transform_indices = @transform_5, window_bounds = array<i64: 16, 256>}]} {
    %c0_i32 = arith.constant 0 : i32
    %0 = arith.cmpi eq, %arg1, %c0_i32 : i32
    %1 = arith.extui %0 : i1 to i32
    %c0_i32_0 = arith.constant 0 : i32
    %2 = arith.cmpi ne, %1, %c0_i32_0 : i32
    scf.if %2 {
      %c0_13 = arith.constant 0 : index
      %c0_14 = arith.constant 0 : index
      %19 = vector.load %arg6[%c0_13, %c0_14] : memref<1x256xf32, #tpu.memory_space<vmem>>, vector<1x256xf32>
      %20 = vector.shape_cast %19 : vector<1x256xf32> to vector<1x256xf32>
      %21 = vector.broadcast %20 : vector<1x256xf32> to vector<16x256xf32>
      %c0_15 = arith.constant 0 : index
      %c0_16 = arith.constant 0 : index
      %22 = vector.load %arg7[%c0_15, %c0_16] : memref<16x256xf32, #tpu.memory_space<vmem>>, vector<16x256xf32>
      tpu.vector_store %arg7[%c0_15, %c0_16], %21 {strides = array<i32>} : memref<16x256xf32, #tpu.memory_space<vmem>>, vector<16x256xf32>,
    } else {
    }
    %c256_i32 = arith.constant 256 : i32
    %3 = arith.muli %arg1, %c256_i32 : i32
    %4 = tpu.assume_multiple %3, 128 : i32
    %c0 = arith.constant 0 : index
    %5 = arith.index_cast %4 : i32 to index
    %6 = vector.load %arg4[%c0, %5] : memref<1x512xf32, #tpu.memory_space<vmem>>, vector<1x256xf32>
    %c0_1 = arith.constant 0 : index
    %c0_2 = arith.constant 0 : index
    %7 = vector.load %arg2[%c0_1, %c0_2] : memref<16x256xf32, #tpu.memory_space<vmem>>, vector<16x256xf32>
    %c0_3 = arith.constant 0 : index
    %c0_4 = arith.constant 0 : index
    %8 = vector.load %arg3[%c0_3, %c0_4] : memref<256x256xf32, #tpu.memory_space<vmem>>, vector<256x256xf32>
    %cst = arith.constant dense<0.000000e+00> : vector<16x256xf32>
    %9 = tpu.matmul %7, %8, %cst {dimension_numbers = #tpu.dot_dimension_numbers<[1], [0], [0], [1], [0, 0, 1, 1], [], []>} : vector<16x256xf32>, vector<256x256xf32>, vector<16x256xf32> -> vector<16x256xf32>
    %10 = vector.broadcast %6 : vector<1x256xf32> to vector<16x256xf32>
    %11 = arith.addf %9, %10 : vector<16x256xf32>
    %cst_5 = arith.constant 0.000000e+00 : f32
    %12 = vector.broadcast %cst_5 : f32 to vector<16x256xf32>
    %13 = arith.maximumf %11, %12 : vector<16x256xf32>
    %c0_6 = arith.constant 0 : index
    %c0_7 = arith.constant 0 : index
    %14 = vector.load %arg7[%c0_6, %c0_7] : memref<16x256xf32, #tpu.memory_space<vmem>>, vector<16x256xf32>
    %c0_8 = arith.constant 0 : index
    %c0_9 = arith.constant 0 : index
    %15 = vector.load %arg5[%c0_8, %c0_9] : memref<256x256xf32, #tpu.memory_space<vmem>>, vector<256x256xf32>
    %cst_10 = arith.constant dense<0.000000e+00> : vector<16x256xf32>
    %16 = tpu.matmul %13, %15, %cst_10 {dimension_numbers = #tpu.dot_dimension_numbers<[1], [0], [0], [1], [0, 0, 1, 1], [], []>} : vector<16x256xf32>, vector<256x256xf32>, vector<16x256xf32> -> vector<16x256xf32>
    %17 = arith.addf %14, %16 : vector<16x256xf32>
    %c0_11 = arith.constant 0 : index
    %c0_12 = arith.constant 0 : index
    %18 = vector.load %arg7[%c0_11, %c0_12] : memref<16x256xf32, #tpu.memory_space<vmem>>, vector<16x256xf32>
    tpu.vector_store %arg7[%c0_11, %c0_12], %17 {strides = array<i32>} : memref<16x256xf32, #tpu.memory_space<vmem>>, vector<16x256xf32>,
    return
  }
  func.func @transform_0(%arg0: i32, %arg1: i32) -> (i32, i32) {
    %c0_i32 = arith.constant 0 : i32
    %c0_i32_0 = arith.constant 0 : i32
    return %arg0, %c0_i32 : i32, i32
  }
  func.func @transform_1(%arg0: i32, %arg1: i32) -> (i32, i32) {
    %c0_i32 = arith.constant 0 : i32
    %c0_i32_0 = arith.constant 0 : i32
    return %c0_i32, %arg1 : i32, i32
  }
  func.func @transform_2(%arg0: i32, %arg1: i32) -> (i32, i32) {
    %c0_i32 = arith.constant 0 : i32
    %c0_i32_0 = arith.constant 0 : i32
    %c0_i32_1 = arith.constant 0 : i32
    return %c0_i32, %c0_i32_0 : i32, i32
  }
  func.func @transform_3(%arg0: i32, %arg1: i32) -> (i32, i32) {
    %c0_i32 = arith.constant 0 : i32
    %c0_i32_0 = arith.constant 0 : i32
    return %arg1, %c0_i32 : i32, i32
  }
  func.func @transform_4(%arg0: i32, %arg1: i32) -> (i32, i32) {
    %c0_i32 = arith.constant 0 : i32
    %c0_i32_0 = arith.constant 0 : i32
    %c0_i32_1 = arith.constant 0 : i32
    return %c0_i32, %c0_i32_0 : i32, i32
  }
  func.func @transform_5(%arg0: i32, %arg1: i32) -> (i32, i32) {
    %c0_i32 = arith.constant 0 : i32
    %c0_i32_0 = arith.constant 0 : i32
    return %arg0, %c0_i32 : i32, i32
  }
}

</mosaic_0001>

<bundles_post_ra>
// kernel: tpu_custom_call.1
= control target key start
LH: loop header
LB: loop body
LE: loop exit
PB: predicated region body
PF: predicated region fallthrough
CT: control target
= control target key end

     0   :  { %s1462_s0 = inlined_call_operand.hbm [shape: f32[16,256], index: 0, kind: input, shape index: {}]   ;;  %s1463_s1 = inlined_call_operand.hbm [shape: f32[256,512], index: 1, kind: input, shape index: {}]   ;;  %s1464_s2 = inlined_call_operand.hbm [shape: f32[1,512], index: 2, kind: input, shape index: {}]   ;;  %s1465_s3 = inlined_call_operand.hbm [shape: f32[512,256], index: 3, kind: input, shape index: {}]   ;;  %s1466_s4 = inlined_call_operand.vmem [shape: f32[1,256], index: 4, kind: input, shape index: {}]   ;;  %s1467_s5 = inlined_call_operand.hbm [shape: f32[16,256], index: 5, kind: output, shape index: {}]  }
   0x1   :  { %1473 = sst [smem:[#allocation17_spill]] %s1462_s0 }
   0x2   :  { %1474 = sst [smem:[#allocation18_spill]] %s1463_s1 }
   0x3   :  { %1475 = sst [smem:[#allocation19_spill]] %s1464_s2 }
   0x4   :  { %10 = vsyncpa [#allocation3], 0 }
   0x5   :  { %11 = vsyncpa [#allocation6], 0 }
   0x6   :  { %13 = vsyncpa [#allocation6 + $0x1], 0 }
   0x7   :  { %14 = vsyncpa [#allocation9], 0 }
   0x8   :  { %16 = vsyncpa [#allocation9 + $0x1], 0 }
   0x9   :  { %17 = vsyncpa [#allocation4], 0  ;;  %s1147_s18 = smov 0   ;;  %s1149_s19 = smov 0  }
   0xa   :  { %s1151_s20 = smov 0   ;;  %s1153_s21 = smov 0  }
   0xb   :  { %s1155_s22 = smov 0   ;;  %s1157_s23 = smov 0  }
   0xc LB: > { %s1176_s24 = sadd.s32 4294967295, %s1105_s23   ;;  %s68_s25 = sadd.s32 1, %s1093_s20  ;;  %s1105_s23 = sphi %s1157_s23, %s23_s23   ;;  %s1101_s22 = sphi %s1155_s22, %s1496_s22   ;;  %s1097_s21 = sphi %s1153_s21, %s1495_s21   ;;  %s1093_s20 = sphi %s1151_s20, %s1494_s20   ;;  %s1089_s19 = sphi %s1149_s19, %s1493_s19   ;;  %s1085_s18 = sphi %s1147_s18, %s1492_s18  }
   0xd   : > { %p75_p0 = scmp.ne.s32.totalorder %s1093_s20, %s1089_s19  ;;  %p76_p1 = scmp.eq.s32.totalorder %s1105_s23, 0 }
   0xe   : > { %p81_p2 = scmp.ne.s32.totalorder %s1089_s19, %s1085_s18  ;;  %p1468_p3 = scmp.eq.s32.totalorder %s1176_s24, 0 }
   0xf   : > { %p77_p4 = por %p76_p1, %p75_p0  ;;  %p789_p5 = scmp.ge.s32.totalorder %s1105_s23, 1 }
  0x10   : > { %p1187_p6 = por %p1468_p3, %p81_p2  ;;  %p186_p7 = scmp.lt.s32.totalorder %s1105_s23, 3 }
  0x11   : > { %s1107_s28 = smov [#allocation7]   ;;  %p846_p10 = scmp.lt.s32.totalorder %s1105_s23, 2 }
  0x12   : > { %s1476_s26 = scalar_select %p1187_p6, 1, 0 }
  0x13   : > { %p1192_p8 = pnand %p789_p5, %p186_p7  ;;  %s216_s29 = sshll.u32 %s1107_s28, 4  ;;  %s217_s29 = int_to_ptr.vmem [resolvable:$true] %s216_s29 }
  0x14   : > { %p1205_p12 = pnand %p846_p10, %p77_p4  ;;  %s1108_s7 = smov [#allocation2]  }
  0x15   : > { %s1477_s27 = scalar_select %p1192_p8, 1, 0 }
  0x16   : > { %p830_p9 = pneg %p1192_p8  ;;  %s202_s8 = sshll.u32 %s1108_s7, 4  ;;  %s203_s8 = int_to_ptr.vmem [resolvable:$true] %s202_s8 }
  0x17   : > { %s918_s9 = scalar_lea.vmem %s217_s29, 64  ;;  %p926_p5 = scmp.lt.s32.totalorder %s217_s29, %s217_s29 }
  0x18   : > { %p1201_p11 = pnand %p830_p9, %p1468_p3  ;;  %p919_p0 = scmp.ne.s32.totalorder %s217_s29, %s918_s9 }
  0x19   : > { %p927_p7 = scmp.lt.s32.totalorder %s918_s9, %s918_s9 }
  0x1a   : > { %p909_p13 = pneg %p1201_p11 }
  0x1b   : > { %p928_p9 = por %p927_p7, %p926_p5 }
  0x1c   : > { %p921_p1 = pnand %p919_p0, %p909_p13 }
  0x1e   : > { %p922_p2 = pneg %p921_p1 }
  0x20   : > { %p929_p3 = pnand %p928_p9, %p922_p2 }
  0x22   : > { %932 = shalt.err (!%p929_p3)
}
  0x23   : > { %s1480_s2 = sld [smem:[#allocation19_spill]]  ;;  %s944_s12 = scalar_lea.vmem %s203_s8, 512 }
  0x24   : > { %p945_p4 = scmp.ne.s32.totalorder %s203_s8, %s944_s12  ;;  %p952_p1 = scmp.lt.s32.totalorder %s203_s8, %s203_s8 }
  0x25   : > { %p953_p6 = scmp.lt.s32.totalorder %s944_s12, %s944_s12 }
  0x26   : > { %p947_p10 = pnand %p945_p4, %p909_p13 }
  0x27   : > { %p954_p8 = por %p953_p6, %p952_p1 }
  0x28   : > { %p948_p0 = pneg %p947_p10 }
  0x29   : > { %836 = dma.hbm_to_vmem [thread:$0]  (!%p1201_p11), %s1480_s2, 64, %s217_s29, [#allocation6]  }
  0x2a   : > { %p955_p5 = pnand %p954_p8, %p948_p0 }
  0x2c   : > { %958 = shalt.err (!%p955_p5)
}
  0x2d   : > { %s1109_s13 = smov 256   ;;  %s1110_s14 = smov 16  }
  0x2e   : > { %s1481_s0 = sld [smem:[#allocation17_spill]]  ;;  %s230_s17 = sand.u32 1, %s1105_s23  }
  0x2f   : > { %s32_s18 = sadd.s32 1, %s1101_s22  ;;  %s1471_s28 = sand.u32 1, %s1093_s20  }
  0x30   : > { %p33_p3 = scmp.ge.s32.totalorder %s32_s18, 2  ;;  %s1235_s29 = sshll.u32 %s1471_s28, 9 }
  0x31   : > { %s811_s7 = sshll.u32 %s1101_s22, 8  ;;  %s1483_s1 = sld [smem:[#allocation18_spill]] }
  0x32   : > { %s1498_s18 = smov (%p33_p3, %s32_s18), 0  ;;  %s231_s16 = scalar_lea.sflag [#allocation6], %s230_s17 }
  0x33   : > { %1482 = sst [smem:[#allocation16_spill]] %s1498_s18  ;;  %s65_s11 = ssub.s32 %s1101_s22, %s1498_s18 }
  0x34   : > { %833 = dma.hbm_to_vmem [thread:$0]  (!%p1201_p11), %s1481_s0, 512, %s203_s8, [#allocation3], %s1109_s13, %s1109_s13, %s1110_s14  }
  0x35   : > { %s234_s8 = scalar_lea.vmem [#allocation5], %s1235_s29  ;;  %p66_p6 = scmp.eq.s32.totalorder %s65_s11, 0 }
  0x36   : > { %s241_s12 = sshll.u32 %s234_s8, 4  ;;  %p961_p8 = pneg %p1205_p12  ;;  %s242_s12 = int_to_ptr.vmem [resolvable:$true] %s241_s12 }
  0x37   : > { %s240_s10 = scalar_lea.hbm %s1483_s1, %s811_s7  ;;  %s972_s28 = scalar_lea.vmem %s242_s12, 8192 }
  0x38   : > { %s1249_s15 = scalar_select %p66_p6, %s1093_s20, %s68_s25  }
  0x39   : > { %p973_p11 = scmp.ne.s32.totalorder %s242_s12, %s972_s28  ;;  %s1111_s30 = smov [#allocation5]  }
  0x3a   : > { %s977_s9 = sshll.u32 %s1111_s30, 4  ;;  %s978_s9 = int_to_ptr.vmem [resolvable:$false] %s977_s9 }
  0x3b   : > { %p975_p13 = pnand %p973_p11, %p961_p8  ;;  %s979_s7 = scalar_lea.vmem %s978_s9, 16384 }
  0x3c   : > { %p980_p7 = scmp.lt.s32.totalorder %s242_s12, %s978_s9  ;;  %p981_p9 = scmp.lt.s32.totalorder %s979_s7, %s972_s28 }
  0x3d   : > { %p976_p2 = pneg %p975_p13 }
  0x3e   : > { %p982_p4 = por %p981_p9, %p980_p7 }
  0x40   : > { %p983_p10 = pnand %p982_p4, %p976_p2 }
  0x42   : > { %986 = shalt.err (!%p983_p10)
}
  0x43   : > { %s1112_s25 = smov 512   ;;  %s813_s17 = sshll.u32 %s1101_s22, 13 }
  0x44   : > { %840 = dma.hbm_to_vmem [thread:$0]  (!%p1205_p12), %s240_s10, 8192, %s242_s12, %s231_s16, %s1112_s25, %s1109_s13, %s1110_s14  }
  0x45   : > { %s262_s30 = scalar_lea.hbm %s1465_s3, %s813_s17  ;;  %s255_s9 = scalar_lea.vmem [#allocation8], %s1235_s29 }
  0x46   : > { %s263_s28 = sshll.u32 %s255_s9, 4  ;;  %s1484_s7 = sand.u32 1, %s1093_s20   ;;  %s264_s28 = int_to_ptr.vmem [resolvable:$true] %s263_s28 }
  0x47   : > { %s252_s0 = scalar_lea.sflag [#allocation9], %s1484_s7  ;;  %s1000_s1 = scalar_lea.vmem %s264_s28, 8192 }
  0x48   : > { %p1001_p0 = scmp.ne.s32.totalorder %s264_s28, %s1000_s1  ;;  %s1113_s2 = smov [#allocation8]  }
  0x49   : > { %s1005_s18 = sshll.u32 %s1113_s2, 4  ;;  %s1006_s18 = int_to_ptr.vmem [resolvable:$false] %s1005_s18 }
  0x4a   : > { %p1003_p1 = pnand %p1001_p0, %p961_p8  ;;  %s1007_s10 = scalar_lea.vmem %s1006_s18, 16384 }
  0x4b   : > { %p1008_p3 = scmp.lt.s32.totalorder %s264_s28, %s1006_s18  ;;  %p1009_p6 = scmp.lt.s32.totalorder %s1007_s10, %s1000_s1 }
  0x4c   : > { %p1004_p5 = pneg %p1003_p1 }
  0x4d   : > { %p1010_p11 = por %p1009_p6, %p1008_p3 }
  0x4f   : > { %p1011_p13 = pnand %p1010_p11, %p1004_p5 }
  0x51   : > { %1014 = shalt.err (!%p1011_p13)
}
  0x52   : > { %843 = dma.hbm_to_vmem [thread:$0]  (!%p1205_p12), %s262_s30, 8192, %s264_s28, %s252_s0, %s1109_s13, %s1109_s13, %s1110_s14  }
  0x53   : > { %p1485_p2 = scmp.ne.s32.totalorder %s1477_s27, 0 }
  0x54   : > { %p1486_p8 = scmp.eq.s32.totalorder (!%p1485_p2), %s1176_s24, 0 }
  0x55   : > { %275 = sbr.rel (%p1485_p2) target bundleno = 590 (0x24e), region = 40 }
  0x5a   : > { %1064 = dma.done.wait (%p1486_p8), [#allocation3], 512   ;;  %p1487_p7 = pmov %p1486_p8 }
  0x5b   : > { %s281_s1 = sand.u32 1, %s1176_s24   ;;  %s283_s2 = sand.u32 1, %s1089_s19  }
  0x5c   : > { %1066 = vsyncadd (%p1487_p7), [#allocation3], 4294966784  ;;  %s802_s18 = sshll.u32 %s283_s2, 9  ;;  %s282_s6 = scalar_lea.sflag [#allocation6], %s281_s1 }
  0x5d   : > { %s1283_s29 = scalar_lea.vmem [#allocation5], %s802_s18  ;;  %p1488_p9 = scmp.ne.s32.totalorder %s1476_s26, 0 }
  0x5f   : > { %1068 = dma.done.wait (%p1488_p9), %s282_s6, 8192  }
  0x60   : > { %1070 = vsyncadd (%p1488_p9), %s282_s6, 4294959104  ;;  %p1489_p12 = pmov %p1487_p7 }
  0x61   : > { %p1490_p4 = pmov %p1487_p7 }
  0x62   : > { %1072 = dma.done.wait (%p1489_p12), [#allocation6], 64  }
  0x63   : > { %1074 = vsyncadd (%p1490_p4), [#allocation6], 4294967232  ;;  %s295_s0 = scalar_lea.sflag [#allocation9], %s283_s2  ;;  %s1293_s27 = scalar_lea.vmem [#allocation8], %s802_s18 }
  0x64   : > { %1076 = dma.done.wait (%p1488_p9), %s295_s0, 8192  }
  0x65   : > { %1078 = vsyncadd (%p1488_p9), %s295_s0, 4294959104  ;;  %p805_p10 = scmp.ne.s32.totalorder %s1097_s21, 0 }
  0x67   : > { %332 = sbr.rel (%p805_p10) target bundleno = 118 (0x76), region = 60 }
  0x6c   : > { %v335_v0 = vlaneseq  ;;  %v333_v2 = vld [vmem:[%s1466_s4] sm:$0x3] }
  0x6e   : > { %v336_v1 = vshrl.u32 %v335_v0, 7 }
  0x70   : > { %v337_v3 = vsub.s32 0, %v336_v1  ;;  %v341_v4 = vsub.s32 1, %v336_v1 }
  0x72   : > { %v338_v5 = vrot.slane %v333_v2, %v337_v3  ;;  %v342_v6 = vrot.slane %v333_v2, %v341_v4 }
  0x74   : > { %345 = vst [vmem:[#allocation10] sm:$0xff] %v338_v5  ;;  %347 = vst [vmem:[#allocation10 + $0x10] sm:$0xff] %v338_v5 }
  0x75   : > { %346 = vst [vmem:[#allocation10 + $0x8] sm:$0xff] %v342_v6  ;;  %348 = vst [vmem:[#allocation10 + $0x18] sm:$0xff] %v342_v6 }
  0x76 PF: > { %v389_v7 = vld [vmem:[%s1283_s29 + $0xf8] sm:$0xff]  ;;  %v388_v8 = vld [vmem:[%s1283_s29 + $0xf0] sm:$0xff]  ;;  %v387_v9 = vld [vmem:[%s1283_s29 + $0xe8] sm:$0xff]  ;;  %s806_s26 = sshll.u32 %s1097_s21, 8  ;;  %s1114_s21 = smov [#allocation10]  }
  0x77   : > { %433 = vmatprep.subr.mxu0 %v389_v7  ;;  %v386_v10 = vld [vmem:[%s1283_s29 + $0xe0] sm:$0xff]  ;;  %v385_v11 = vld [vmem:[%s1283_s29 + $0xd8] sm:$0xff]  ;;  %v384_v12 = vld [vmem:[%s1283_s29 + $0xd0] sm:$0xff]  ;;  %s350_s12 = sshra.s32 %s806_s26, 7  ;;  %s677_s25 = sshll.u32 %s1114_s21, 4  ;;  %s678_s25 = int_to_ptr.vmem [resolvable:$true] %s677_s25 }
  0x78   : > { %434 = vmatpush1.msra.mxu0 %v388_v8  ;;  %v383_v13 = vld [vmem:[%s1283_s29 + $0xc8] sm:$0xff]  ;;  %v382_v14 = vld [vmem:[%s1283_s29 + $0xc0] sm:$0xff]  ;;  %v381_v15 = vld [vmem:[%s1283_s29 + $0xb8] sm:$0xff]  ;;  %s352_s16 = scalar_lea.vmem [#allocation7], %s350_s12  ;;  %p849_p0 = scmp.eq.s32.totalorder %s1176_s24, 1 }
  0x79   : > { %435 = vmatprep.subr.mxu0 %v387_v9  ;;  %v380_v16 = vld [vmem:[%s1283_s29 + $0xb0] sm:$0xff]  ;;  %v379_v17 = vld [vmem:[%s1283_s29 + $0xa8] sm:$0xff]  ;;  %v378_v18 = vld [vmem:[%s1283_s29 + $0xa0] sm:$0xff]  ;;  %s1015_s17 = scalar_lea.vmem %s678_s25, 512  ;;  %p1022_p6 = scmp.lt.s32.totalorder %s678_s25, %s678_s25 }
  0x7a   : > { %436 = vmatpush1.msra.mxu0 %v386_v10  ;;  %v377_v19 = vld [vmem:[%s1283_s29 + $0x98] sm:$0xff]  ;;  %v376_v20 = vld [vmem:[%s1283_s29 + $0x90] sm:$0xff]  ;;  %v375_v21 = vld [vmem:[%s1283_s29 + $0x88] sm:$0xff]  ;;  %p1016_p1 = scmp.ne.s32.totalorder %s678_s25, %s1015_s17  ;;  %p1023_p11 = scmp.lt.s32.totalorder %s1015_s17, %s1015_s17 }
  0x7b   : > { %437 = vmatprep.subr.mxu0 %v385_v11  ;;  %v374_v22 = vld [vmem:[%s1283_s29 + $0x80] sm:$0xff]  ;;  %v373_v23 = vld [vmem:[%s1283_s29 + $0x78] sm:$0xff]  ;;  %v372_v24 = vld [vmem:[%s1283_s29 + $0x70] sm:$0xff] }
  0x7c   : > { %438 = vmatpush1.msra.mxu0 %v384_v12  ;;  %v371_v25 = vld [vmem:[%s1283_s29 + $0x68] sm:$0xff]  ;;  %v370_v26 = vld [vmem:[%s1283_s29 + $0x60] sm:$0xff]  ;;  %v369_v27 = vld [vmem:[%s1283_s29 + $0x58] sm:$0xff]  ;;  %p1017_p5 = pnand %p1016_p1, %p849_p0  ;;  %p1024_p13 = por %p1023_p11, %p1022_p6 }
  0x7d   : > { %439 = vmatprep.subr.mxu0 %v383_v13  ;;  %v368_v28 = vld [vmem:[%s1283_s29 + $0x50] sm:$0xff]  ;;  %v367_v29 = vld [vmem:[%s1283_s29 + $0x48] sm:$0xff]  ;;  %v366_v30 = vld [vmem:[%s1283_s29 + $0x40] sm:$0xff] }
  0x7e   : > { %440 = vmatpush1.msra.mxu0 %v382_v14  ;;  %v355_v31 = vld [vmem:[#allocation2 + $0x8] sm:$0xff]  ;;  %v365_v32 = vld [vmem:[%s1283_s29 + $0x38] sm:$0xff]  ;;  %v364_v33 = vld [vmem:[%s1283_s29 + $0x30] sm:$0xff]  ;;  %p1018_p3 = pneg %p1017_p5 }
  0x7f   : > { %441 = vmatprep.subr.mxu0 %v381_v15  ;;  %497 = vmatprep.mubr.f32.mxu0 %v355_v31  ;;  %v549_v34 = vld [vmem:[%s1293_s27 + $0xf8] sm:$0xff]  ;;  %v548_v35 = vld [vmem:[%s1293_s27 + $0xf0] sm:$0xff]  ;;  %v547_v36 = vld [vmem:[%s1293_s27 + $0xe8] sm:$0xff] }
  0x80   : > { %442 = vmatpush1.msra.mxu0 %v380_v16  ;;  %582 = vmatprep.subr.mxu1 %v549_v34  ;;  %v546_v37 = vld [vmem:[%s1293_s27 + $0xe0] sm:$0xff]  ;;  %v545_v39 = vld [vmem:[%s1293_s27 + $0xd8] sm:$0xff]  ;;  %v544_v41 = vld [vmem:[%s1293_s27 + $0xd0] sm:$0xff]  ;;  %p1025_p2 = pnand %p1024_p13, %p1018_p3 }
  0x81   : > { %443 = vmatprep.subr.mxu0 %v379_v17  ;;  %v363_v38 = vld [vmem:[%s1283_s29 + $0x28] sm:$0xff]  ;;  %583 = vmatpush1.msra.mxu1 %v548_v35  ;;  %v362_v40 = vld [vmem:[%s1283_s29 + $0x20] sm:$0xff]  ;;  %v361_v42 = vld [vmem:[%s1283_s29 + $0x18] sm:$0xff] }
  0x82   : > { %444 = vmatpush1.msra.mxu0 %v378_v18  ;;  %584 = vmatprep.subr.mxu1 %v547_v36  ;;  %v543_v43 = vld [vmem:[%s1293_s27 + $0xc8] sm:$0xff]  ;;  %v542_v45 = vld [vmem:[%s1293_s27 + $0xc0] sm:$0xff]  ;;  %v541_v47 = vld [vmem:[%s1293_s27 + $0xb8] sm:$0xff] }
  0x83   : > { %445 = vmatprep.subr.mxu0 %v377_v19  ;;  %585 = vmatpush1.msra.mxu1 %v546_v37  ;;  %v360_v44 = vld [vmem:[%s1283_s29 + $0x10] sm:$0xff]  ;;  %v359_v46 = vld [vmem:[%s1283_s29 + $0x8] sm:$0xff]  ;;  %v358_v48 = vld [vmem:[%s1283_s29] sm:$0xff] }
  0x84   : > { %446 = vmatpush1.msra.mxu0 %v376_v20  ;;  %586 = vmatprep.subr.mxu1 %v545_v39  ;;  %v540_v49 = vld [vmem:[%s1293_s27 + $0xb0] sm:$0xff]  ;;  %v539_v51 = vld [vmem:[%s1293_s27 + $0xa8] sm:$0xff]  ;;  %v538_v53 = vld [vmem:[%s1293_s27 + $0xa0] sm:$0xff] }
  0x85   : > { %447 = vmatprep.subr.mxu0 %v375_v21  ;;  %587 = vmatpush1.msra.mxu1 %v544_v41  ;;  %v421_v50 = vld [vmem:[%s1283_s29 + $0x1f8] sm:$0xff]  ;;  %v420_v52 = vld [vmem:[%s1283_s29 + $0x1f0] sm:$0xff]  ;;  %v419_v54 = vld [vmem:[%s1283_s29 + $0x1e8] sm:$0xff] }
  0x86   : > { %448 = vmatpush1.msra.mxu0 %v374_v22  ;;  %588 = vmatprep.subr.mxu1 %v543_v43  ;;  %v537_v55 = vld [vmem:[%s1293_s27 + $0x98] sm:$0xff]  ;;  %v536_v57 = vld [vmem:[%s1293_s27 + $0x90] sm:$0xff]  ;;  %v535_v59 = vld [vmem:[%s1293_s27 + $0x88] sm:$0xff] }
  0x87   : > { %449 = vmatprep.subr.mxu0 %v373_v23  ;;  %589 = vmatpush1.msra.mxu1 %v542_v45  ;;  %v418_v56 = vld [vmem:[%s1283_s29 + $0x1e0] sm:$0xff]  ;;  %v417_v58 = vld [vmem:[%s1283_s29 + $0x1d8] sm:$0xff]  ;;  %v416_v60 = vld [vmem:[%s1283_s29 + $0x1d0] sm:$0xff] }
  0x88   : > { %450 = vmatpush1.msra.mxu0 %v372_v24  ;;  %590 = vmatprep.subr.mxu1 %v541_v47  ;;  %v534_v61 = vld [vmem:[%s1293_s27 + $0x80] sm:$0xff]  ;;  %v533_v63 = vld [vmem:[%s1293_s27 + $0x78] sm:$0xff]  ;;  %v532_v1 = vld [vmem:[%s1293_s27 + $0x70] sm:$0xff] }
  0x89   : > { %451 = vmatprep.subr.mxu0 %v371_v25  ;;  %591 = vmatpush1.msra.mxu1 %v540_v49  ;;  %v415_v62 = vld [vmem:[%s1283_s29 + $0x1c8] sm:$0xff]  ;;  %v414_v0 = vld [vmem:[%s1283_s29 + $0x1c0] sm:$0xff]  ;;  %v413_v2 = vld [vmem:[%s1283_s29 + $0x1b8] sm:$0xff] }
  0x8a   : > { %452 = vmatpush1.msra.mxu0 %v370_v26  ;;  %592 = vmatprep.subr.mxu1 %v539_v51  ;;  %v531_v3 = vld [vmem:[%s1293_s27 + $0x68] sm:$0xff]  ;;  %v530_v5 = vld [vmem:[%s1293_s27 + $0x60] sm:$0xff]  ;;  %v529_v7 = vld [vmem:[%s1293_s27 + $0x58] sm:$0xff] }
  0x8b   : > { %453 = vmatprep.subr.mxu0 %v369_v27  ;;  %593 = vmatpush1.msra.mxu1 %v538_v53  ;;  %v412_v4 = vld [vmem:[%s1283_s29 + $0x1b0] sm:$0xff]  ;;  %v411_v6 = vld [vmem:[%s1283_s29 + $0x1a8] sm:$0xff]  ;;  %v410_v8 = vld [vmem:[%s1283_s29 + $0x1a0] sm:$0xff] }
  0x8c   : > { %454 = vmatpush1.msra.mxu0 %v368_v28  ;;  %594 = vmatprep.subr.mxu1 %v537_v55  ;;  %v528_v9 = vld [vmem:[%s1293_s27 + $0x50] sm:$0xff]  ;;  %v527_v11 = vld [vmem:[%s1293_s27 + $0x48] sm:$0xff]  ;;  %v526_v13 = vld [vmem:[%s1293_s27 + $0x40] sm:$0xff] }
  0x8d   : > { %455 = vmatprep.subr.mxu0 %v367_v29  ;;  %595 = vmatpush1.msra.mxu1 %v536_v57  ;;  %v409_v10 = vld [vmem:[%s1283_s29 + $0x198] sm:$0xff]  ;;  %v408_v12 = vld [vmem:[%s1283_s29 + $0x190] sm:$0xff]  ;;  %v407_v14 = vld [vmem:[%s1283_s29 + $0x188] sm:$0xff] }
  0x8e   : > { %456 = vmatpush1.msra.mxu0 %v366_v30  ;;  %596 = vmatprep.subr.mxu1 %v535_v59  ;;  %v525_v15 = vld [vmem:[%s1293_s27 + $0x38] sm:$0xff]  ;;  %v524_v17 = vld [vmem:[%s1293_s27 + $0x30] sm:$0xff]  ;;  %v523_v19 = vld [vmem:[%s1293_s27 + $0x28] sm:$0xff] }
  0x8f   : > { %457 = vmatprep.subr.mxu0 %v365_v32  ;;  %597 = vmatpush1.msra.mxu1 %v534_v61  ;;  %v406_v16 = vld [vmem:[%s1283_s29 + $0x180] sm:$0xff]  ;;  %v405_v18 = vld [vmem:[%s1283_s29 + $0x178] sm:$0xff]  ;;  %v404_v20 = vld [vmem:[%s1283_s29 + $0x170] sm:$0xff] }
  0x90   : > { %458 = vmatpush1.msra.mxu0 %v364_v33  ;;  %598 = vmatprep.subr.mxu1 %v533_v63  ;;  %v522_v21 = vld [vmem:[%s1293_s27 + $0x20] sm:$0xff]  ;;  %v521_v23 = vld [vmem:[%s1293_s27 + $0x18] sm:$0xff]  ;;  %v520_v25 = vld [vmem:[%s1293_s27 + $0x10] sm:$0xff] }
  0x91   : > { %459 = vmatprep.subr.mxu0 %v363_v38  ;;  %599 = vmatpush1.msra.mxu1 %v532_v1  ;;  %v403_v22 = vld [vmem:[%s1283_s29 + $0x168] sm:$0xff]  ;;  %v402_v24 = vld [vmem:[%s1283_s29 + $0x160] sm:$0xff]  ;;  %v401_v26 = vld [vmem:[%s1283_s29 + $0x158] sm:$0xff] }
  0x92   : > { %460 = vmatpush1.msra.mxu0 %v362_v40  ;;  %600 = vmatprep.subr.mxu1 %v531_v3  ;;  %v519_v27 = vld [vmem:[%s1293_s27 + $0x8] sm:$0xff]  ;;  %v518_v29 = vld [vmem:[%s1293_s27] sm:$0xff]  ;;  %v581_v31 = vld [vmem:[%s1293_s27 + $0x1f8] sm:$0xff] }
  0x93   : > { %461 = vmatprep.subr.mxu0 %v361_v42  ;;  %601 = vmatpush1.msra.mxu1 %v530_v5  ;;  %v400_v28 = vld [vmem:[%s1283_s29 + $0x150] sm:$0xff]  ;;  %v399_v30 = vld [vmem:[%s1283_s29 + $0x148] sm:$0xff]  ;;  %v398_v32 = vld [vmem:[%s1283_s29 + $0x140] sm:$0xff] }
  0x94   : > { %462 = vmatpush1.msra.mxu0 %v360_v44  ;;  %602 = vmatprep.subr.mxu1 %v529_v7  ;;  %v580_v33 = vld [vmem:[%s1293_s27 + $0x1f0] sm:$0xff]  ;;  %v579_v35 = vld [vmem:[%s1293_s27 + $0x1e8] sm:$0xff]  ;;  %v578_v37 = vld [vmem:[%s1293_s27 + $0x1e0] sm:$0xff] }
  0x95   : > { %463 = vmatprep.subr.mxu0 %v359_v46  ;;  %603 = vmatpush1.msra.mxu1 %v528_v9  ;;  %v397_v34 = vld [vmem:[%s1283_s29 + $0x138] sm:$0xff]  ;;  %v396_v36 = vld [vmem:[%s1283_s29 + $0x130] sm:$0xff]  ;;  %v395_v38 = vld [vmem:[%s1283_s29 + $0x128] sm:$0xff] }
  0x96   : > { %464 = vmatpush1.msra.mxu0 %v358_v48  ;;  %604 = vmatprep.subr.mxu1 %v527_v11  ;;  %v577_v39 = vld [vmem:[%s1293_s27 + $0x1d8] sm:$0xff]  ;;  %v576_v41 = vld [vmem:[%s1293_s27 + $0x1d0] sm:$0xff]  ;;  %v575_v43 = vld [vmem:[%s1293_s27 + $0x1c8] sm:$0xff]  ;;  %v423_v11 = vlaneseq }
  0x97   : > { %465 = vmatprep.subr.mxu0 %v421_v50  ;;  %605 = vmatpush1.msra.mxu1 %v526_v13  ;;  %v394_v40 = vld [vmem:[%s1283_s29 + $0x120] sm:$0xff]  ;;  %v393_v42 = vld [vmem:[%s1283_s29 + $0x118] sm:$0xff]  ;;  %v392_v44 = vld [vmem:[%s1283_s29 + $0x110] sm:$0xff] }
  0x98   : > { %466 = vmatpush2.msra.mxu0 %v420_v52  ;;  %606 = vmatprep.subr.mxu1 %v525_v15  ;;  %v574_v45 = vld [vmem:[%s1293_s27 + $0x1c0] sm:$0xff]  ;;  %v573_v47 = vld [vmem:[%s1293_s27 + $0x1b8] sm:$0xff]  ;;  %v572_v49 = vld [vmem:[%s1293_s27 + $0x1b0] sm:$0xff] }
  0x99   : > { %467 = vmatprep.subr.mxu0 %v419_v54  ;;  %607 = vmatpush1.msra.mxu1 %v524_v17  ;;  %v391_v46 = vld [vmem:[%s1283_s29 + $0x108] sm:$0xff]  ;;  %v390_v48 = vld [vmem:[%s1283_s29 + $0x100] sm:$0xff]  ;;  %v357_v52 = vld [vmem:[#allocation2 + $0x18] sm:$0xff] }
  0x9a   : > { %468 = vmatpush2.msra.mxu0 %v418_v56  ;;  %608 = vmatprep.subr.mxu1 %v523_v19  ;;  %v354_v50 = vld [vmem:[#allocation2] sm:$0xff]  ;;  %v571_v51 = vld [vmem:[%s1293_s27 + $0x1a8] sm:$0xff]  ;;  %v568_v55 = vld [vmem:[%s1293_s27 + $0x190] sm:$0xff] }
  0x9b   : > { %469 = vmatprep.subr.mxu0 %v417_v58  ;;  %609 = vmatpush1.msra.mxu1 %v522_v21  ;;  %v570_v53 = vld [vmem:[%s1293_s27 + $0x1a0] sm:$0xff]  ;;  %v569_v54 = vld [vmem:[%s1293_s27 + $0x198] sm:$0xff]  ;;  %v356_v56 = vld [vmem:[#allocation2 + $0x10] sm:$0xff] }
  0x9c   : > { %470 = vmatpush2.msra.mxu0 %v416_v60  ;;  %610 = vmatprep.subr.mxu1 %v521_v23  ;;  %v567_v57 = vld [vmem:[%s1293_s27 + $0x188] sm:$0xff]  ;;  %v566_v58 = vld [vmem:[%s1293_s27 + $0x180] sm:$0xff]  ;;  %v565_v59 = vld [vmem:[%s1293_s27 + $0x178] sm:$0xff] }
  0x9d   : > { %471 = vmatprep.subr.mxu0 %v415_v62  ;;  %611 = vmatpush1.msra.mxu1 %v520_v25  ;;  %v564_v60 = vld [vmem:[%s1293_s27 + $0x170] sm:$0xff]  ;;  %v563_v61 = vld [vmem:[%s1293_s27 + $0x168] sm:$0xff]  ;;  %v562_v62 = vld [vmem:[%s1293_s27 + $0x160] sm:$0xff] }
  0x9e   : > { %472 = vmatpush2.msra.mxu0 %v414_v0  ;;  %612 = vmatprep.subr.mxu1 %v519_v27  ;;  %v561_v63 = vld [vmem:[%s1293_s27 + $0x158] sm:$0xff]  ;;  %v560_v0 = vld [vmem:[%s1293_s27 + $0x150] sm:$0xff]  ;;  %v559_v1 = vld [vmem:[%s1293_s27 + $0x148] sm:$0xff] }
  0x9f   : > { %473 = vmatprep.subr.mxu0 %v413_v2  ;;  %613 = vmatpush1.msra.mxu1 %v518_v29  ;;  %v558_v2 = vld [vmem:[%s1293_s27 + $0x140] sm:$0xff]  ;;  %v557_v3 = vld [vmem:[%s1293_s27 + $0x138] sm:$0xff]  ;;  %v555_v5 = vld [vmem:[%s1293_s27 + $0x128] sm:$0xff] }
  0xa0   : > { %474 = vmatpush2.msra.mxu0 %v412_v4  ;;  %614 = vmatprep.subr.mxu1 %v581_v31  ;;  %v556_v4 = vld [vmem:[%s1293_s27 + $0x130] sm:$0xff]  ;;  %v553_v7 = vld [vmem:[%s1293_s27 + $0x118] sm:$0xff]  ;;  %v551_v9 = vld [vmem:[%s1293_s27 + $0x108] sm:$0xff] }
  0xa1   : > { %475 = vmatprep.subr.mxu0 %v411_v6  ;;  %615 = vmatpush2.msra.mxu1 %v580_v33  ;;  %v554_v6 = vld [vmem:[%s1293_s27 + $0x120] sm:$0xff] }
  0xa2   : > { %476 = vmatpush2.msra.mxu0 %v410_v8  ;;  %616 = vmatprep.subr.mxu1 %v579_v35  ;;  %v552_v8 = vld [vmem:[%s1293_s27 + $0x110] sm:$0xff] }
  0xa3   : > { %477 = vmatprep.subr.mxu0 %v409_v10  ;;  %617 = vmatpush2.msra.mxu1 %v578_v37  ;;  %v550_v10 = vld [vmem:[%s1293_s27 + $0x100] sm:$0xff]  ;;  %v516_v35 = vld [vmem:[#allocation10 + $0x10] sm:$0xff] }
  0xa4   : > { %478 = vmatpush2.msra.mxu0 %v408_v12  ;;  %618 = vmatprep.subr.mxu1 %v577_v39  ;;  %v424_v12 = vshrl.u32 %v423_v11, 7 }
  0xa5   : > { %479 = vmatprep.subr.mxu0 %v407_v14  ;;  %619 = vmatpush2.msra.mxu1 %v576_v41  ;;  %v353_v14 = vld [vmem:[%s352_s16] sm:$0x3] }
  0xa6   : > { %480 = vmatpush2.msra.mxu0 %v406_v16  ;;  %620 = vmatprep.subr.mxu1 %v575_v43  ;;  %v425_v13 = vsub.s32 0, %v424_v12  ;;  %v429_v15 = vsub.s32 1, %v424_v12 }
  0xa7   : > { %481 = vmatprep.subr.mxu0 %v405_v18  ;;  %621 = vmatpush2.msra.mxu1 %v574_v45 }
  0xa8   : > { %482 = vmatpush2.msra.mxu0 %v404_v20  ;;  %622 = vmatprep.subr.mxu1 %v573_v47  ;;  %v426_v16 = vrot.slane %v353_v14, %v425_v13  ;;  %v430_v17 = vrot.slane %v353_v14, %v429_v15 }
  0xa9   : > { %483 = vmatprep.subr.mxu0 %v403_v22  ;;  %623 = vmatpush2.msra.mxu1 %v572_v49 }
  0xaa   : > { %484 = vmatpush2.msra.mxu0 %v402_v24  ;;  %624 = vmatprep.subr.mxu1 %v571_v51 }
  0xab   : > { %485 = vmatprep.subr.mxu0 %v401_v26  ;;  %625 = vmatpush2.msra.mxu1 %v570_v53 }
  0xac   : > { %486 = vmatpush2.msra.mxu0 %v400_v28  ;;  %626 = vmatprep.subr.mxu1 %v569_v54 }
  0xad   : > { %487 = vmatprep.subr.mxu0 %v399_v30  ;;  %627 = vmatpush2.msra.mxu1 %v568_v55  ;;  %v514_v30 = vld [vmem:[#allocation10] sm:$0xff] }
  0xae   : > { %488 = vmatpush2.msra.mxu0 %v398_v32  ;;  %628 = vmatprep.subr.mxu1 %v567_v57  ;;  %v515_v32 = vld [vmem:[#allocation10 + $0x8] sm:$0xff] }
  0xaf   : > { %489 = vmatprep.subr.mxu0 %v397_v34  ;;  %629 = vmatpush2.msra.mxu1 %v566_v58 }
  0xb0   : > { %490 = vmatpush2.msra.mxu0 %v396_v36  ;;  %630 = vmatprep.subr.mxu1 %v565_v59 }
  0xb1   : > { %491 = vmatprep.subr.mxu0 %v395_v38  ;;  %631 = vmatpush2.msra.mxu1 %v564_v60  ;;  %v517_v38 = vld [vmem:[#allocation10 + $0x18] sm:$0xff] }
  0xb2   : > { %492 = vmatpush2.msra.mxu0 %v394_v40  ;;  %632 = vmatprep.subr.mxu1 %v563_v61 }
  0xb3   : > { %493 = vmatprep.subr.mxu0 %v393_v42  ;;  %633 = vmatpush2.msra.mxu1 %v562_v62 }
  0xb4   : > { %494 = vmatpush2.msra.mxu0 %v392_v44  ;;  %634 = vmatprep.subr.mxu1 %v561_v63 }
  0xb5   : > { %495 = vmatprep.subr.mxu0 %v391_v46  ;;  %635 = vmatpush2.msra.mxu1 %v560_v0 }
  0xb6   : > { %496 = vmatpush2.msra.mxu0 %v390_v48  ;;  %636 = vmatprep.subr.mxu1 %v559_v1 }
  0xb7   : > { %498 = vmatmul.mubr.f32.vlgmr.msra.gmra.mxu0 %v354_v50  ;;  %637 = vmatpush2.msra.mxu1 %v558_v2 }
  0xb8   : > { %503 = vmatprep.mubr.f32.mxu0 %v357_v52  ;;  %638 = vmatprep.subr.mxu1 %v557_v3 }
  0xb9   : > { %639 = vmatpush2.msra.mxu1 %v556_v4 }
  0xba   : > { %640 = vmatprep.subr.mxu1 %v555_v5 }
  0xbb   : > { %504 = vmatmul.mubr.f32.gmra.mxu0 %v356_v56  ;;  %641 = vmatpush2.msra.mxu1 %v554_v6 }
  0xbc   : > { %642 = vmatprep.subr.mxu1 %v553_v7 }
  0xbd   : > { %643 = vmatpush2.msra.mxu1 %v552_v8 }
  0xbe   : > { %644 = vmatprep.subr.mxu1 %v551_v9 }
  0xbf   : > { %645 = vmatpush2.msra.mxu1 %v550_v10 }
 0x177   : > { %v499_v18 = vpop.f32.mrf.mxu0 }
 0x178   : > { %v500_v19 = vadd.f32 %v499_v18, %v426_v16 }
 0x179   : > { %v501_v20 = vpop.f32.mrf.mxu0 }
 0x17a   : > { %v502_v21 = vadd.f32 %v501_v20, %v430_v17  ;;  %v510_v24 = vmax.f32 %v500_v19, 0.0 }
 0x17b   : > { %v505_v22 = vpop.f32.mrf.mxu0 }
 0x17c   : > { %v511_v23 = vmax.f32 %v502_v21, 0.0  ;;  %v506_v25 = vadd.f32 %v505_v22, %v426_v16 }
 0x17d   : > { %v507_v26 = vpop.f32.mrf.mxu0 }
 0x17e   : > { %v508_v27 = vadd.f32 %v507_v26, %v430_v17  ;;  %646 = vmatprep.mubr.f32.mxu1 %v511_v23  ;;  %v512_v29 = vmax.f32 %v506_v25, 0.0 }
 0x17f   : > { %647 = vmatmul.mubr.f32.vlgmr.msra.gmra.mxu1 %v510_v24 }
 0x180   : > { %v513_v28 = vmax.f32 %v508_v27, 0.0 }
 0x182   : > { %652 = vmatprep.mubr.f32.mxu1 %v513_v28 }
 0x183   : > { %653 = vmatmul.mubr.f32.gmra.mxu1 %v512_v29 }
 0x23f   : > { %v648_v31 = vpop.f32.mrf.mxu1 }
 0x240   : > { %v659_v33 = vadd.f32 %v648_v31, %v514_v30 }
 0x241   : > { %v650_v34 = vpop.f32.mrf.mxu1 }
 0x242   : > { %663 = vst [vmem:[#allocation10] sm:$0xff] %v659_v33  ;;  %v660_v36 = vadd.f32 %v650_v34, %v515_v32 }
 0x243   : > { %v654_v37 = vpop.f32.mrf.mxu1 }
 0x244   : > { %664 = vst [vmem:[#allocation10 + $0x8] sm:$0xff] %v660_v36  ;;  %v661_v39 = vadd.f32 %v654_v37, %v516_v35 }
 0x245   : > { %v656_v40 = vpop.f32.mrf.mxu1 }
 0x246   : > { %665 = vst [vmem:[#allocation10 + $0x10] sm:$0xff] %v661_v39  ;;  %v662_v41 = vadd.f32 %v656_v40, %v517_v38 }
 0x248   : > { %666 = vst [vmem:[#allocation10 + $0x18] sm:$0xff] %v662_v41 }
 0x249   : > { %1028 = shalt.err (!%p1025_p2)
}
 0x24a   : > { %s1115_s11 = smov 256   ;;  %s1116_s8 = smov 16  }
 0x24b   : > { %827 = dma.vmem_to_hbm [thread:$0]  (%p849_p0), %s678_s25, 512, %s1467_s5, [#allocation4], %s1115_s11, %s1115_s11, %s1116_s8  }
 0x24c   : > { %1080 = dma.done.wait (%p849_p0), [#allocation4], 512  }
 0x24d   : > { %1082 = vsyncadd (%p849_p0), [#allocation4], 4294966784 }
 0x24e PF: > { %s23_s23 = sadd.s32 1, %s1105_s23   ;;  %s1491_s28 = sld [smem:[#allocation16_spill]] }
 0x24f   : > { %p20_p8 = scmp.ge.s32.totalorder %s23_s23, 4   ;;  %s1492_s18 = smov %s1089_s19 }
 0x250   : > { %s1493_s19 = smov %s1093_s20  ;;  %s1494_s20 = smov %s1249_s15 }
 0x251   : > { %s1495_s21 = smov %s1101_s22  ;;  %22 = sbr.rel (!%p20_p8) target bundleno = 12 (0xc), region = 106 }
 0x254   : > { %s1496_s22 = smov %s1491_s28 }
 0x256   :  { %693 = vsyncpa [#allocation3], 1 }
 0x257   :  { %695 = vsyncpa [#allocation3 + $0x1], 1 }
 0x258   :  { %696 = vsyncpa [#allocation6], 1 }
 0x259   :  { %698 = vsyncpa [#allocation6 + $0x1], 1 }
 0x25a   :  { %699 = vsyncpa [#allocation9], 1 }
 0x25b   :  { %701 = vsyncpa [#allocation9 + $0x1], 1 }
 0x25c   :  { %702 = vsyncpa [#allocation4], 1 }
 0x25d   :  { %704 = vsyncpa [#allocation4 + $0x1], 1 }

</bundles_post_ra>
